<compile_context>
chip_gen: v6e
topology: v6e:2x2x1
jax: 0.10.0
libtpu: 0.0.40
codegen_flags: <defaults>
</compile_context>

<pallas_src>
import functools

import numpy as np
import jax
import jax.numpy as jnp
from jax.experimental import pallas as pl
from jax.experimental.pallas import tpu as pltpu


def _round_up(x, m):
    return ((x + m - 1) // m) * m


def _round_down(x, m):
    return (x // m) * m


def _mpjpe_kernel(o_ref, t_ref, gj_ref, gp_ref, out_ref, *, scale_over_j):
    """(TB, G*J*3) inputs -> (TB, G) per-pose mean joint errors.

    gj_ref: (G*J*3, G*J) 0/1 matrix summing the 3 coords of each joint.
    gp_ref: (G*J,   G)   0/1 matrix summing the J joints of each pose.
    Both are resident constants contracted on the otherwise-idle MXU;
    Precision.HIGHEST keeps the 0/1 sums exact in f32.
    """
    # Upcast inside the kernel so sub-f32 inputs only move half the HBM bytes.
    d = o_ref[...].astype(jnp.float32) - t_ref[...].astype(jnp.float32)
    sq = d * d                                                   # (TB, G*J*3)
    ssq = jnp.dot(sq, gj_ref[...], precision=jax.lax.Precision.HIGHEST,
                  preferred_element_type=jnp.float32)            # (TB, G*J)
    dist = jnp.sqrt(ssq)                                         # per-joint distance
    pose = jnp.dot(dist, gp_ref[...], precision=jax.lax.Precision.HIGHEST,
                   preferred_element_type=jnp.float32)           # (TB, G)
    # Fold the 1000x (pose_in_m) scale and the 1/num_joints mean into one scalar.
    out_ref[...] = pose * scale_over_j


def mpjpe_perpose(output, target, target_mask=None, pose_in_m=True,
                  group=None, tile_rows=None):
    """Pallas TPU implementation of MPJPE_PERPOSE.forward.

    output, target: (B, J*3) or (B, J, 3).  Returns (B,) float32.
    target_mask is accepted but unused (matches the PyTorch forward).
    """
    del target_mask  # unused by the PyTorch reference forward as well
    batch = output.shape[0]
    o2 = output.reshape(batch, -1)          # contiguous -> metadata-only reshape
    t2 = target.reshape(batch, -1)
    j3 = o2.shape[1]
    assert j3 > 0 and j3 % 3 == 0, "trailing dims must flatten to J*3"
    num_joints = j3 // 3
    itemsize = max(o2.dtype.itemsize, t2.dtype.itemsize)
    scale = 1000.0 if pose_in_m else 1.0

    # --- pick G: poses folded per lane row (metadata-only reshape). ---------
    if group is None:
        # Cap G so the grouping matmul (~G*J/itemsize flops per input byte at
        # HIGHEST precision) stays well under the DMA time even on v5e.
        g = min(32, max(1, (24 * itemsize) // num_joints), batch)
        while g > 1 and batch % g:
            g -= 1
    else:
        g = int(group)
        assert g >= 1 and batch % g == 0, "group must divide the batch size"
    rows = batch // g
    lanes = g * j3
    o2 = o2.reshape(rows, lanes)            # fold G poses per row (metadata-only)
    t2 = t2.reshape(rows, lanes)

    # --- grouping matrices (built once on host, resident in VMEM). ----------
    gj = jnp.asarray(np.kron(np.eye(g * num_joints, dtype=np.float32),
                             np.ones((3, 1), dtype=np.float32)))          # (lanes, G*J)
    gp = jnp.asarray(np.kron(np.eye(g, dtype=np.float32),
                             np.ones((num_joints, 1), dtype=np.float32)))  # (G*J, G)

    # --- generation-aware tile sizing. ---------------------------------------
    sub = {4: 8, 2: 16, 1: 32}.get(itemsize, 8)   # sublane pack of the inputs
    try:
        vmem_cap = int(pltpu.get_tpu_info().vmem_capacity_bytes)
    except Exception:
        vmem_cap = 64 * 1024 * 1024               # conservative (v7x per-TC VMEM)
    if tile_rows is None:
        lanes_pad = _round_up(lanes, 128)
        in_bytes = 2 * 2 * lanes_pad * itemsize   # 2 inputs x 2 pipeline buffers
        out_bytes = 2 * _round_up(g, 128) * 4     # (TB, G) f32 x 2 buffers
        mat_bytes = 2 * 4 * (_round_up(lanes, 8) * _round_up(g * num_joints, 128)
                             + _round_up(g * num_joints, 8) * _round_up(g, 128))
        budget = max(4 * 1024 * 1024, (2 * vmem_cap) // 5 - mat_bytes)  # ~40% VMEM
        tile_rows = max(sub, _round_down(budget // (in_bytes + out_bytes), sub))
        # Keep >= 2 grid steps when the batch allows: restores DMA/writeback
        # pipelining and lets v7x's two TensorCores split the "parallel" axis.
        if rows >= 2 * sub:
            tile_rows = min(tile_rows, _round_up((rows + 1) // 2, sub))
    else:
        tile_rows = int(tile_rows)
        if tile_rows < rows:
            tile_rows = _round_up(max(1, tile_rows), sub)
    if tile_rows >= rows:
        tile_rows = rows                          # single block covering all rows

    grid = (pl.cdiv(rows, tile_rows),)
    vmem_limit = int(max(32 * 1024 * 1024,
                         min((3 * vmem_cap) // 4, 96 * 1024 * 1024)))
    kernel = functools.partial(_mpjpe_kernel, scale_over_j=scale / num_joints)

    loss = pl.pallas_call(
        kernel,
        out_shape=jax.ShapeDtypeStruct((rows, g), jnp.float32),
        grid=grid,
        in_specs=[
            pl.BlockSpec((tile_rows, lanes), lambda i: (i, 0)),
            pl.BlockSpec((tile_rows, lanes), lambda i: (i, 0)),
            # Resident constants: block index never changes -> DMA'd once.
            pl.BlockSpec(gj.shape, lambda i: (0, 0)),
            pl.BlockSpec(gp.shape, lambda i: (0, 0)),
        ],
        out_specs=pl.BlockSpec((tile_rows, g), lambda i: (i, 0)),
        compiler_params=pltpu.CompilerParams(
            dimension_semantics=("parallel",),
            vmem_limit_bytes=vmem_limit,
        ),
    )(o2, t2, gj, gp)
    return loss.reshape(batch)                    # (B//G, G) -> (B,) metadata-only


def _reference(output, target, pose_in_m=True):
    B = output.shape[0]
    o = output.reshape(B, -1, 3).astype(jnp.float32)
    t = target.reshape(B, -1, 3).astype(jnp.float32)
    J = o.shape[1]
    if pose_in_m:
        o = o * 1000.0
        t = t * 1000.0
    return jnp.sqrt(((o - t) ** 2).sum(axis=2)).sum(axis=1) / J


if __name__ == "__main__":
    key = jax.random.PRNGKey(0)
    k1, k2, k3, k4 = jax.random.split(key, 4)

    # Small case consistent with the module: batch=2, 8 joints x 3 coords.
    B, J = 2, 8
    output = jax.random.normal(k1, (B, J * 3), dtype=jnp.float32) * 0.5
    target = jax.random.normal(k2, (B, J * 3), dtype=jnp.float32) * 0.5

    loss = jax.block_until_ready(mpjpe_perpose(output, target, pose_in_m=True))
    ref = _reference(output, target, pose_in_m=True)
    assert loss.shape == (B,)
    assert jnp.allclose(loss, ref, rtol=2e-3, atol=1e-2), (loss, ref)

    # Exercise pose-folding + the multi-step pipelined grid path
    # (G=4 poses per lane row, 16 rows, tile_rows=8 -> 2 grid steps).
    B2, J2 = 64, 8
    o2 = jax.random.normal(k3, (B2, J2 * 3), dtype=jnp.float32) * 0.5
    t2 = jax.random.normal(k4, (B2, J2 * 3), dtype=jnp.float32) * 0.5
    loss2 = jax.block_until_ready(
        mpjpe_perpose(o2, t2, pose_in_m=True, group=4, tile_rows=8))
    ref2 = _reference(o2, t2, pose_in_m=True)
    assert loss2.shape == (B2,)
    assert jnp.allclose(loss2, ref2, rtol=2e-3, atol=1e-2), (loss2, ref2)

    # Fully automatic config + pose_in_m=False path (no scaling).
    loss3 = jax.block_until_ready(mpjpe_perpose(o2, t2, pose_in_m=False))
    ref3 = _reference(o2, t2, pose_in_m=False)
    assert jnp.allclose(loss3, ref3, rtol=2e-3, atol=1e-4), (loss3, ref3)

    # bf16 inputs: kernel upcasts in VMEM (half the HBM bytes moved).
    ob = output.astype(jnp.bfloat16)
    tb = target.astype(jnp.bfloat16)
    loss4 = jax.block_until_ready(mpjpe_perpose(ob, tb, pose_in_m=True))
    ref4 = _reference(ob, tb, pose_in_m=True)
    assert jnp.allclose(loss4, ref4, rtol=2e-3, atol=1e-2), (loss4, ref4)

    # (B, J, 3) input shape path (same semantics as the PyTorch module).
    loss5 = jax.block_until_ready(
        mpjpe_perpose(output.reshape(B, J, 3), target.reshape(B, J, 3)))
    assert jnp.allclose(loss5, ref, rtol=2e-3, atol=1e-2), (loss5, ref)

    print("KERNEL_OK")
</pallas_src>

<mosaic_0001>
module attributes {stable_mosaic.version = 11 : i64} {
  func.func @_mpjpe_kernel(%arg0: i32, %arg1: memref<1x48xf32, #tpu.memory_space<vmem>>, %arg2: memref<1x48xf32, #tpu.memory_space<vmem>>, %arg3: memref<48x16xf32, #tpu.memory_space<vmem>>, %arg4: memref<16x2xf32, #tpu.memory_space<vmem>>, %arg5: memref<1x2xf32, #tpu.memory_space<vmem>>) attributes {dimension_semantics = [#tpu.dimension_semantics<parallel>], iteration_bounds = array<i64: 1>, scalar_prefetch = 0 : i64, scratch_operands = 0 : i64, tpu.core_type = #tpu.core_type<tc>, window_params = [{transform_indices = @transform_0, window_bounds = array<i64: 1, 48>}, {transform_indices = @transform_1, window_bounds = array<i64: 1, 48>}, {pipeline_mode = #tpu.pipeline_mode<synchronous>, transform_indices = @transform_2, window_bounds = array<i64: 48, 16>}, {pipeline_mode = #tpu.pipeline_mode<synchronous>, transform_indices = @transform_3, window_bounds = array<i64: 16, 2>}, {transform_indices = @transform_4, window_bounds = array<i64: 1, 2>}]} {
    %c0 = arith.constant 0 : index
    %c0_0 = arith.constant 0 : index
    %0 = vector.load %arg1[%c0, %c0_0] : memref<1x48xf32, #tpu.memory_space<vmem>>, vector<1x48xf32>
    %c0_1 = arith.constant 0 : index
    %c0_2 = arith.constant 0 : index
    %1 = vector.load %arg2[%c0_1, %c0_2] : memref<1x48xf32, #tpu.memory_space<vmem>>, vector<1x48xf32>
    %2 = arith.subf %0, %1 : vector<1x48xf32>
    %3 = arith.mulf %2, %2 : vector<1x48xf32>
    %c0_3 = arith.constant 0 : index
    %c0_4 = arith.constant 0 : index
    %4 = vector.load %arg3[%c0_3, %c0_4] : memref<48x16xf32, #tpu.memory_space<vmem>>, vector<48x16xf32>
    %cst = arith.constant dense<0.000000e+00> : vector<1x16xf32>
    %5 = tpu.matmul %3, %4, %cst {dimension_numbers = #tpu.dot_dimension_numbers<[1], [0], [0], [1], [0, 0, 1, 1], [], []>, precision = #tpu.contract_precision<fp32>} : vector<1x48xf32>, vector<48x16xf32>, vector<1x16xf32> -> vector<1x16xf32>
    %6 = math.sqrt %5 : vector<1x16xf32>
    %c0_5 = arith.constant 0 : index
    %c0_6 = arith.constant 0 : index
    %7 = vector.load %arg4[%c0_5, %c0_6] : memref<16x2xf32, #tpu.memory_space<vmem>>, vector<16x2xf32>
    %cst_7 = arith.constant dense<0.000000e+00> : vector<1x2xf32>
    %8 = tpu.matmul %6, %7, %cst_7 {dimension_numbers = #tpu.dot_dimension_numbers<[1], [0], [0], [1], [0, 0, 1, 1], [], []>, precision = #tpu.contract_precision<fp32>} : vector<1x16xf32>, vector<16x2xf32>, vector<1x2xf32> -> vector<1x2xf32>
    %cst_8 = arith.constant 1.250000e+02 : f32
    %9 = vector.broadcast %cst_8 : f32 to vector<1x2xf32>
    %10 = arith.mulf %8, %9 : vector<1x2xf32>
    %c0_9 = arith.constant 0 : index
    %c0_10 = arith.constant 0 : index
    %11 = vector.load %arg5[%c0_9, %c0_10] : memref<1x2xf32, #tpu.memory_space<vmem>>, vector<1x2xf32>
    tpu.vector_store %arg5[%c0_9, %c0_10], %10 {strides = array<i32>} : memref<1x2xf32, #tpu.memory_space<vmem>>, vector<1x2xf32>,
    return
  }
  func.func @transform_0(%arg0: i32) -> (i32, i32) {
    %c0_i32 = arith.constant 0 : i32
    %c0_i32_0 = arith.constant 0 : i32
    return %arg0, %c0_i32 : i32, i32
  }
  func.func @transform_1(%arg0: i32) -> (i32, i32) {
    %c0_i32 = arith.constant 0 : i32
    %c0_i32_0 = arith.constant 0 : i32
    return %arg0, %c0_i32 : i32, i32
  }
  func.func @transform_2(%arg0: i32) -> (i32, i32) {
    %c0_i32 = arith.constant 0 : i32
    %c0_i32_0 = arith.constant 0 : i32
    %c0_i32_1 = arith.constant 0 : i32
    return %c0_i32, %c0_i32_0 : i32, i32
  }
  func.func @transform_3(%arg0: i32) -> (i32, i32) {
    %c0_i32 = arith.constant 0 : i32
    %c0_i32_0 = arith.constant 0 : i32
    %c0_i32_1 = arith.constant 0 : i32
    return %c0_i32, %c0_i32_0 : i32, i32
  }
  func.func @transform_4(%arg0: i32) -> (i32, i32) {
    %c0_i32 = arith.constant 0 : i32
    %c0_i32_0 = arith.constant 0 : i32
    return %arg0, %c0_i32 : i32, i32
  }
}

</mosaic_0001>

<bundles_post_ra>
// kernel: tpu_custom_call.1
= control target key start
LH: loop header
LB: loop body
LE: loop exit
PB: predicated region body
PF: predicated region fallthrough
CT: control target
= control target key end

     0   :  { %v1251_v3 = vmov 0.0   ;;  %vm1252_vm0 = vmmov 0   ;;  %s1494_s0 = inlined_call_operand.vmem [shape: f32[1,48], index: 0, kind: input, shape index: {}]   ;;  %s1495_s1 = inlined_call_operand.vmem [shape: f32[1,48], index: 1, kind: input, shape index: {}]   ;;  %s1496_s2 = inlined_call_operand.vmem [shape: f32[48,16], index: 2, kind: input, shape index: {}]   ;;  %s1497_s3 = inlined_call_operand.vmem [shape: f32[16,2], index: 3, kind: input, shape index: {}]   ;;  %s1498_s4 = inlined_call_operand.hbm [shape: f32[1,2], index: 4, kind: output, shape index: {}]  }
   0x1   :  { %v27_v0 = vld [vmem:[%s1496_s2 + $0x28] sm:$0xff]  ;;  %v26_v1 = vld [vmem:[%s1496_s2 + $0x20] sm:$0xff]  ;;  %v25_v2 = vld [vmem:[%s1496_s2 + $0x18] sm:$0xff]  ;;  %1092 = vmatprep.subr.mxu0 %v1251_v3  ;;  %1107 = vmatprep.subr.mxu1 %v1251_v3 }
   0x2   :  { %v1289_v4 = vand.u32 4294901760, %v27_v0  ;;  %v1291_v5 = vand.u32 4294901760, %v26_v1  ;;  %v1293_v6 = vand.u32 4294901760, %v25_v2  ;;  %v24_v7 = vld [vmem:[%s1496_s2 + $0x10] sm:$0xff]  ;;  %v23_v8 = vld [vmem:[%s1496_s2 + $0x8] sm:$0xff]  ;;  %v22_v9 = vld [vmem:[%s1496_s2] sm:$0xff]  ;;  %1104 = vmatprep.mubr.msk.f32.mxu0 %vm1252_vm0, %v1251_v3  ;;  %1119 = vmatprep.mubr.msk.f32.mxu1 %vm1252_vm0, %v1251_v3 }
   0x3   :  { %v1305_v10 = vand.u32 4294901760, %v24_v7  ;;  %v1307_v11 = vand.u32 4294901760, %v23_v8  ;;  %v1309_v12 = vand.u32 4294901760, %v22_v9  ;;  %v18_v13 = vld [vmem:[%s1494_s0] sm:$0x1] }
   0x4   :  { %1093 = vmatpush3.msra.mxu0 %v1289_v4  ;;  %v1320_v14 = vsub.f32 %v27_v0, %v1289_v4  ;;  %v1323_v15 = vsub.f32 %v26_v1, %v1291_v5  ;;  %v1326_v16 = vsub.f32 %v25_v2, %v1293_v6  ;;  %v19_v17 = vld [vmem:[%s1495_s1] sm:$0x1] }
   0x5   :  { %9 = vsyncpa [#allocation3], 0  ;;  %1094 = vmatprep.subr.mxu0 %v1251_v3  ;;  %v20_v18 = vsub.f32 %v18_v13, %v19_v17  ;;  %v1333_v19 = vsub.f32 %v24_v7, %v1305_v10  ;;  %v1336_v20 = vsub.f32 %v23_v8, %v1307_v11  ;;  %v1339_v21 = vsub.f32 %v22_v9, %v1309_v12  ;;  %v551_v47 = vld [vmem:[%s1497_s3 + $0x8] sm:$0xff]  ;;  %v550_v48 = vld [vmem:[%s1497_s3] sm:$0xff]  ;;  %s1253_s3 = smov [#allocation2]  }
   0x6   :  { %1095 = vmatpush3.msra.mxu0 %v1291_v5  ;;  %v136_v22 = vand.u32 4294901760, %v1320_v14  ;;  %v143_v23 = vand.u32 4294901760, %v1323_v15  ;;  %v150_v24 = vand.u32 4294901760, %v1326_v16  ;;  %vm28_vm1 = vcmask 392192   ;;  %s1024_s6 = sshll.u32 %s1253_s3, 4  ;;  %s1025_s6 = int_to_ptr.vmem [resolvable:$true] %s1024_s6 }
   0x7   :  { %1096 = vmatprep.subr.mxu0 %v1251_v3  ;;  %v21_v25 = vmul.f32 %v20_v18, %v20_v18  ;;  %v157_v26 = vand.u32 4294901760, %v1333_v19  ;;  %v164_v30 = vand.u32 4294901760, %v1336_v20  ;;  %v171_v32 = vand.u32 4294901760, %v1339_v21  ;;  %s1229_s7 = scalar_lea.vmem %s1025_s6, 16  ;;  %s1233_s8 = scalar_lea.vmem %s1025_s6, 32 }
   0x8   :  { %1097 = vmatpush3.msra.mxu0 %v1293_v6  ;;  %v137_v27 = vsub.f32 %v1320_v14, %v136_v22  ;;  %v144_v28 = vsub.f32 %v1323_v15, %v143_v23  ;;  %v151_v29 = vsub.f32 %v1326_v16, %v150_v24  ;;  %v585_v49 = vand.u32 4294901760, %v551_v47  ;;  %p1230_p0 = scmp.ne.s32.totalorder %s1025_s6, %s1229_s7  ;;  %p1234_p1 = scmp.lt.s32.totalorder %s1025_s6, %s1025_s6 }
   0x9   :  { %1098 = vmatprep.subr.mxu0 %v1251_v3  ;;  %v30_v31 = vsel %vm28_vm1, %v21_v25, 0  ;;  %v158_v36 = vsub.f32 %v1333_v19, %v157_v26  ;;  %v165_v39 = vsub.f32 %v1336_v20, %v164_v30  ;;  %v172_v42 = vsub.f32 %v1339_v21, %v171_v32  ;;  %p1235_p2 = scmp.lt.s32.totalorder %s1233_s8, %s1229_s7 }
   0xa   :  { %1099 = vmatpush3.msra.mxu0 %v1305_v10  ;;  %v138_v33 = vand.u32 4294901760, %v137_v27  ;;  %v145_v34 = vand.u32 4294901760, %v144_v28  ;;  %v1361_v35 = vand.u32 4294901760, %v30_v31  ;;  %v152_v37 = vand.u32 4294901760, %v151_v29 }
   0xb   :  { %1100 = vmatprep.subr.mxu0 %v1251_v3  ;;  %v159_v41 = vand.u32 4294901760, %v158_v36  ;;  %v166_v44 = vand.u32 4294901760, %v165_v39  ;;  %v173_v46 = vand.u32 4294901760, %v172_v42  ;;  %v588_v50 = vand.u32 4294901760, %v550_v48  ;;  %p1236_p3 = por %p1235_p2, %p1234_p1 }
   0xc   :  { %1108 = vmatpush3.msra.mxu1 %v138_v33  ;;  %1101 = vmatpush3.msra.mxu0 %v1307_v11  ;;  %v104_v38 = vsub.f32 %v30_v31, %v1361_v35  ;;  %v1459_v51 = vsub.f32 %v551_v47, %v585_v49  ;;  %vm552_vm3 = vcmask 130048   ;;  %vm1016_vm5 = vcmask 8192  }
   0xd   :  { %1109 = vmatprep.subr.mxu1 %v1251_v3  ;;  %1102 = vmatprep.subr.mxu0 %v1251_v3  ;;  %v1461_v52 = vsub.f32 %v550_v48, %v588_v50  ;;  %p1237_p4 = pnand %p1236_p3, %p1230_p0 }
   0xe   :  { %1110 = vmatpush3.msra.mxu1 %v145_v34  ;;  %1103 = vmatpush3.msra.mxu0 %v1309_v12  ;;  %v105_v40 = vand.u32 4294901760, %v104_v38  ;;  %v664_v53 = vand.u32 4294901760, %v1459_v51 }
   0xf   :  { %1111 = vmatprep.subr.mxu1 %v1251_v3  ;;  %1122 = vmatprep.subr.mxu0 %v1251_v3  ;;  %v671_v54 = vand.u32 4294901760, %v1461_v52 }
  0x10   :  { %1112 = vmatpush3.msra.mxu1 %v152_v37  ;;  %v106_v43 = vsub.f32 %v104_v38, %v105_v40  ;;  %v665_v55 = vsub.f32 %v1459_v51, %v664_v53 }
  0x11   :  { %1113 = vmatprep.subr.mxu1 %v1251_v3  ;;  %v672_v56 = vsub.f32 %v1461_v52, %v671_v54 }
  0x12   :  { %v107_v45 = vand.u32 4294901760, %v106_v43  ;;  %1114 = vmatpush3.msra.mxu1 %v159_v41  ;;  %v666_v57 = vand.u32 4294901760, %v665_v55 }
  0x13   :  { %1115 = vmatprep.subr.mxu1 %v1251_v3  ;;  %v673_v58 = vand.u32 4294901760, %v672_v56 }
  0x14   :  { %1105 = vmatmul.mubr.f32.vlgmr.msra.gmra.mxu0 %v107_v45  ;;  %1116 = vmatpush3.msra.mxu1 %v166_v44 }
  0x15   :  { %1123 = vmatpush3.msra.mxu0 %v1320_v14  ;;  %1117 = vmatprep.subr.mxu1 %v1251_v3 }
  0x16   :  { %1124 = vmatprep.subr.mxu0 %v1251_v3  ;;  %1118 = vmatpush3.msra.mxu1 %v173_v46 }
  0x17   :  { %1125 = vmatpush3.msra.mxu0 %v1323_v15  ;;  %1120 = vmatmul.mubr.f32.vlgmr.msra.gmra.mxu1 %v1361_v35 }
  0x18   :  { %1126 = vmatprep.subr.mxu0 %v1251_v3  ;;  %1137 = vmatprep.subr.mxu1 %v1251_v3 }
  0x19   :  { %1127 = vmatpush3.msra.mxu0 %v1326_v16  ;;  %1138 = vmatpush3.msra.mxu1 %v1289_v4 }
  0x1a   :  { %1128 = vmatprep.subr.mxu0 %v1251_v3  ;;  %1139 = vmatprep.subr.mxu1 %v1251_v3 }
  0x1b   :  { %1129 = vmatpush3.msra.mxu0 %v1333_v19  ;;  %1140 = vmatpush3.msra.mxu1 %v1291_v5 }
  0x1c   :  { %1130 = vmatprep.subr.mxu0 %v1251_v3  ;;  %1134 = vmatprep.mubr.msk.f32.mxu0 %vm1252_vm0, %v1251_v3 }
  0x1d   :  { %1131 = vmatpush3.msra.mxu0 %v1336_v20  ;;  %1141 = vmatprep.subr.mxu1 %v1251_v3 }
  0x1e   :  { %1132 = vmatprep.subr.mxu0 %v1251_v3  ;;  %1142 = vmatpush3.msra.mxu1 %v1293_v6 }
  0x1f   :  { %1133 = vmatpush3.msra.mxu0 %v1339_v21  ;;  %1143 = vmatprep.subr.mxu1 %v1251_v3 }
  0x20   :  { %1135 = vmatmul.mubr.f32.vlgmr.msra.gmra.mxu0 %v104_v38  ;;  %1152 = vmatprep.subr.mxu0 %v1251_v3 }
  0x21   :  { %1153 = vmatpush3.msra.mxu0 %v136_v22  ;;  %1144 = vmatpush3.msra.mxu1 %v1305_v10 }
  0x22   :  { %1154 = vmatprep.subr.mxu0 %v1251_v3  ;;  %1145 = vmatprep.subr.mxu1 %v1251_v3 }
  0x23   :  { %1155 = vmatpush3.msra.mxu0 %v143_v23  ;;  %1146 = vmatpush3.msra.mxu1 %v1307_v11 }
  0x24   :  { %1156 = vmatprep.subr.mxu0 %v1251_v3  ;;  %1147 = vmatprep.subr.mxu1 %v1251_v3 }
  0x25   :  { %1157 = vmatpush3.msra.mxu0 %v150_v24  ;;  %1148 = vmatpush3.msra.mxu1 %v1309_v12 }
  0x26   :  { %1149 = vmatprep.mubr.msk.f32.mxu1 %vm1252_vm0, %v1251_v3  ;;  %1158 = vmatprep.subr.mxu0 %v1251_v3 }
  0x27   :  { %1150 = vmatmul.mubr.f32.vlgmr.msra.gmra.mxu1 %v105_v40  ;;  %1159 = vmatpush3.msra.mxu0 %v157_v26 }
  0x28   :  { %1167 = vmatprep.subr.mxu1 %v1251_v3  ;;  %1160 = vmatprep.subr.mxu0 %v1251_v3 }
  0x29   :  { %1168 = vmatpush3.msra.mxu1 %v1289_v4  ;;  %1161 = vmatpush3.msra.mxu0 %v164_v30 }
  0x2a   :  { %1169 = vmatprep.subr.mxu1 %v1251_v3  ;;  %1162 = vmatprep.subr.mxu0 %v1251_v3 }
  0x2b   :  { %1170 = vmatpush3.msra.mxu1 %v1291_v5  ;;  %1163 = vmatpush3.msra.mxu0 %v171_v32 }
  0x2c   :  { %1164 = vmatprep.mubr.msk.f32.mxu0 %vm1252_vm0, %v1251_v3  ;;  %1171 = vmatprep.subr.mxu1 %v1251_v3 }
  0x2d   :  { %1165 = vmatmul.mubr.f32.vlgmr.msra.gmra.mxu0 %v1361_v35  ;;  %1172 = vmatpush3.msra.mxu1 %v1293_v6 }
  0x2e   :  { %1173 = vmatprep.subr.mxu1 %v1251_v3  ;;  %1179 = vmatprep.mubr.msk.f32.mxu1 %vm1252_vm0, %v1251_v3 }
  0x2f   :  { %1174 = vmatpush3.msra.mxu1 %v1305_v10  ;;  %1182 = vmatprep.subr.mxu0 %v1251_v3 }
  0x30   :  { %1175 = vmatprep.subr.mxu1 %v1251_v3  ;;  %1186 = vmatprep.mubr.msk.f32.mxu0 %vm1252_vm0, %v1251_v3 }
  0x31   :  { %1176 = vmatpush3.msra.mxu1 %v1307_v11  ;;  %1183 = vmatpush3.msra.mxu0 %v585_v49 }
  0x32   :  { %1177 = vmatprep.subr.mxu1 %v1251_v3  ;;  %1184 = vmatprep.subr.mxu0 %v1251_v3 }
  0x33   :  { %1178 = vmatpush3.msra.mxu1 %v1309_v12  ;;  %1185 = vmatpush3.msra.mxu0 %v588_v50 }
  0x34   :  { %1180 = vmatmul.mubr.f32.vlgmr.msra.gmra.mxu1 %v1361_v35  ;;  %1189 = vmatprep.subr.mxu1 %v1251_v3 }
  0x35   :  { %1193 = vmatprep.mubr.msk.f32.mxu1 %vm1252_vm0, %v1251_v3  ;;  %1196 = vmatprep.subr.mxu0 %v1251_v3 }
  0x36   :  { %1190 = vmatpush3.msra.mxu1 %v666_v57 }
  0x37   :  { %1191 = vmatprep.subr.mxu1 %v1251_v3 }
  0x38   :  { %1192 = vmatpush3.msra.mxu1 %v673_v58 }
  0x39   :  { %1203 = vmatprep.subr.mxu1 %v1251_v3 }
  0xd4   :  { %v109_v59 = vpop.f32.mrf.mxu0 }
  0xd6   :  { %v1106_v60 = vpop.f32.mrf.mxu0 }
  0xd7   :  { %v210_v61 = vpop.f32.mrf.mxu1 }
  0xd8   :  { %v211_v4 = vadd.f32 %v210_v61, %v109_v59 }
  0xd9   :  { %v1121_v62 = vpop.f32.mrf.mxu1 }
  0xe0   :  { %v294_v63 = vpop.f32.mrf.mxu0 }
  0xe1   :  { %v295_v6 = vadd.f32 %v294_v63, %v211_v4 }
  0xe2   :  { %v1136_v0 = vpop.f32.mrf.mxu0 }
  0xe7   :  { %v373_v1 = vpop.f32.mrf.mxu1 }
  0xe8   :  { %v374_v8 = vadd.f32 %v373_v1, %v295_v6 }
  0xe9   :  { %v1151_v2 = vpop.f32.mrf.mxu1 }
  0xed   :  { %v462_v5 = vpop.f32.mrf.mxu0 }
  0xee   :  { %v463_v9 = vadd.f32 %v462_v5, %v374_v8 }
  0xef   :  { %v1166_v7 = vpop.f32.mrf.mxu0 }
  0xf4   :  { %v539_v10 = vpop.f32.mrf.mxu1 }
  0xf5   :  { %v540_v11 = vadd.f32 %v539_v10, %v463_v9 }
  0xf6   :  { %v1181_v12 = vpop.f32.mrf.mxu1 }
  0xf7   :  { %1227 = vrsqrt.f32 %v540_v11  ;;  %vm545_vm2 = vcmp.eq.f32.partialorder %v540_v11, inf  ;;  %v548_v15 = vand.u32 2147483648, %v540_v11  ;;  %vm547_vm4 = vcmp.eq.f32.partialorder %v540_v11, 0.0 }
 0x104   :  { %v1228_v13 = vpop.eup %1227 }
 0x105   :  { %v544_v14 = vmul.f32 %v1228_v13, %v540_v11 }
 0x107   :  { %v546_v16 = vsel %vm545_vm2, %v540_v11, %v544_v14 }
 0x108   :  { %v549_v17 = vsel %vm547_vm4, %v548_v15, %v546_v16 }
 0x109   :  { %v554_v18 = vsel %vm552_vm3, %v549_v17, 0 }
 0x10a   :  { %v623_v19 = vand.u32 4294901760, %v554_v18 }
 0x10c   :  { %v624_v20 = vsub.f32 %v554_v18, %v623_v19  ;;  %1194 = vmatmul.mubr.f32.vlgmr.msra.gmra.mxu1 %v623_v19 }
 0x10d   :  { %1204 = vmatpush3.msra.mxu1 %v585_v49  ;;  %1207 = vmatprep.mubr.msk.f32.mxu1 %vm1252_vm0, %v1251_v3 }
 0x10e   :  { %1205 = vmatprep.subr.mxu1 %v1251_v3  ;;  %v625_v21 = vand.u32 4294901760, %v624_v20 }
 0x10f   :  { %1206 = vmatpush3.msra.mxu1 %v588_v50 }
 0x110   :  { %1208 = vmatmul.mubr.f32.vlgmr.msra.gmra.mxu1 %v625_v21  ;;  %1217 = vmatprep.subr.mxu1 %v1251_v3  ;;  %v626_v22 = vsub.f32 %v624_v20, %v625_v21 }
 0x111   :  { %1218 = vmatpush3.msra.mxu1 %v585_v49  ;;  %1221 = vmatprep.mubr.msk.f32.mxu1 %vm1252_vm0, %v1251_v3 }
 0x112   :  { %1219 = vmatprep.subr.mxu1 %v1251_v3  ;;  %v627_v23 = vand.u32 4294901760, %v626_v22 }
 0x113   :  { %1220 = vmatpush3.msra.mxu1 %v588_v50 }
 0x114   :  { %1187 = vmatmul.mubr.f32.vlgmr.msra.gmra.mxu0 %v627_v23  ;;  %1222 = vmatmul.mubr.f32.vlgmr.msra.gmra.mxu1 %v623_v19 }
 0x115   :  { %1197 = vmatpush3.msra.mxu0 %v1459_v51  ;;  %1200 = vmatprep.mubr.msk.f32.mxu0 %vm1252_vm0, %v1251_v3 }
 0x116   :  { %1198 = vmatprep.subr.mxu0 %v1251_v3 }
 0x117   :  { %1199 = vmatpush3.msra.mxu0 %v1461_v52 }
 0x118   :  { %1210 = vmatprep.subr.mxu0 %v1251_v3  ;;  %1201 = vmatmul.mubr.f32.vlgmr.msra.gmra.mxu0 %v624_v20 }
 0x119   :  { %1211 = vmatpush3.msra.mxu0 %v664_v53  ;;  %1214 = vmatprep.mubr.msk.f32.mxu0 %vm1252_vm0, %v1251_v3 }
 0x11a   :  { %1212 = vmatprep.subr.mxu0 %v1251_v3 }
 0x11b   :  { %1213 = vmatpush3.msra.mxu0 %v671_v54 }
 0x11c   :  { %1215 = vmatmul.mubr.f32.vlgmr.msra.gmra.mxu0 %v623_v19 }
 0x1cc   :  { %v710_v24 = vpop.f32.mrf.mxu1 }
 0x1ce   :  { %v1195_v25 = vpop.f32.mrf.mxu1 }
 0x1d0   :  { %v861_v26 = vpop.f32.mrf.mxu1 }
 0x1d2   :  { %v1209_v27 = vpop.f32.mrf.mxu1 }
 0x1d4   :  { %v629_v28 = vpop.f32.mrf.mxu0  ;;  %v1011_v29 = vpop.f32.mrf.mxu1 }
 0x1d5   :  { %v711_v32 = vadd.f32 %v710_v24, %v629_v28 }
 0x1d6   :  { %v1188_v30 = vpop.f32.mrf.mxu0  ;;  %v1223_v31 = vpop.f32.mrf.mxu1 }
 0x1d8   :  { %v786_v33 = vpop.f32.mrf.mxu0 }
 0x1d9   :  { %v787_v34 = vadd.f32 %v786_v33, %v711_v32 }
 0x1da   :  { %v1202_v35 = vpop.f32.mrf.mxu0 }
 0x1db   :  { %v862_v36 = vadd.f32 %v861_v26, %v787_v34 }
 0x1dc   :  { %v938_v37 = vpop.f32.mrf.mxu0 }
 0x1dd   :  { %v939_v38 = vadd.f32 %v938_v37, %v862_v36 }
 0x1de   :  { %v1216_v3 = vpop.f32.mrf.mxu0 }
 0x1df   :  { %v1012_v39 = vadd.f32 %v1011_v29, %v939_v38 }
 0x1e1   :  { %v1015_v40 = vmul.f32 125.0, %v1012_v39 }
 0x1e3   :  { %1017 = vst.msk [vmem:[#allocation2] sm:$0x1] %vm1016_vm5, %v1015_v40 }
 0x1e4   :  { %1240 = shalt.err (!%p1237_p4)
}
 0x1e5   :  { %1027 = dma.vmem_to_hbm [thread:$0]  %s1025_s6, 16, %s1498_s4, [#allocation3]  }
 0x1e6   :  { %1249 = dma.done.wait [#allocation3], 16  }
 0x1e7   :  { %1250 = vsyncadd [#allocation3], 4294967280 }
 0x1e8   :  { %1031 = vsyncpa [#allocation3], 1 }

</bundles_post_ra>
